<compile_context>
chip_gen: v5e
topology: v5e:2x2
jax: 0.10.0
libtpu: 0.0.40
codegen_flags: <defaults>
</compile_context>

<pallas_src>
import functools

import jax
import jax.numpy as jnp
from jax.experimental import pallas as pl
from jax.experimental.pallas import tpu as pltpu


def _double_conv_kernel(x_ref, w1_ref, b1_ref, w2_ref, b2_ref, o_ref, *, H):
    """One block of B_blk batch elements (M = B_blk*H rows) per grid step.

    x_ref  : (M, W*c_in)           input rows (NHWC with W,C folded into lanes, batch*H rows)
    w1_ref : (3*W*c_in,  W*c_out)  banded conv1 weight, BN1 scale folded into columns
    b1_ref : (1, W*c_out)          folded BN1 shift, tiled across W
    w2_ref : (3*W*c_out, W*c_out)  banded conv2 weight, BN2 scale folded into columns
    b2_ref : (1, W*c_out)          folded BN2 shift
    o_ref  : (M, W*c_out)          output rows
    """
    M = x_ref.shape[0]

    # Row position within its batch element; used to zero the halo rows that would
    # otherwise leak between adjacent batch elements packed into the same block.
    row = jax.lax.broadcasted_iota(jnp.int32, (M, 1), 0) % H
    first_row = row == 0           # (M, 1): top row of each image -> no "up" neighbor
    last_row = row == (H - 1)      # (M, 1): bottom row of each image -> no "down" neighbor

    def conv_bn_relu(a, w_ref, b_ref):
        # a: (M, L). slab = [up-neighbor rows | rows | down-neighbor rows] along lanes.
        # ky taps index the three L-wide blocks; kx taps + W-boundary zeros live inside the
        # banded weight, so a single MXU matmul does the whole 3x3 conv.
        m, L = a.shape
        z = jnp.zeros((1, L), jnp.float32)
        up = jnp.where(first_row, 0.0, jnp.concatenate([z, a[: m - 1]], axis=0))
        dn = jnp.where(last_row, 0.0, jnp.concatenate([a[1:], z], axis=0))
        slab = jnp.concatenate([up, a, dn], axis=1)                     # (M, 3L)
        y = jnp.dot(slab, w_ref[...], preferred_element_type=jnp.float32)
        return jnp.maximum(y + b_ref[...], 0.0)                         # (M, W*c_out)

    y1 = conv_bn_relu(x_ref[...], w1_ref, b1_ref)   # conv1 + BN1 + ReLU (stays in vregs)
    y2 = conv_bn_relu(y1, w2_ref, b2_ref)           # conv2 + BN2 + ReLU
    o_ref[...] = y2.astype(o_ref.dtype)             # lane-dense unmasked store


def _banded_conv_weight(w, W):
    """PyTorch OIHW (c_out, c_in, 3, 3) -> (3*W*c_in, W*c_out) banded matrix B.

    B[ky*W*c_in + wi*c_in + ci, wo*c_out + co] = w[co, ci, ky, wi - wo + 1] if the kx tap
    (wi - wo + 1) is in {0,1,2}, else 0.  Out-of-range wi never appear, which implements
    'same' zero padding along W implicitly.
    """
    c_out, c_in = w.shape[0], w.shape[1]
    w_t = jnp.transpose(w, (2, 3, 1, 0)).astype(jnp.float32)      # (ky, kx, ci, co)
    kx = jnp.arange(3)[:, None, None]
    wi = jnp.arange(W)[None, :, None]
    wo = jnp.arange(W)[None, None, :]
    band = (wi == wo + kx - 1).astype(jnp.float32)                # (kx, w_in, w_out)
    B = jnp.einsum('xio,yxcd->yicod', band, w_t)                  # (ky, w_in, ci, w_out, co)
    return B.reshape(3 * W * c_in, W * c_out)


def double_conv_pallas(x_nchw, params, *, batch_block=8):
    """x_nchw: (N, C_in, H, W) float32. Returns (N, C_out, H, W)."""
    w1, g1, be1, m1, v1, w2, g2, be2, m2, v2 = params
    eps = 1e-5
    c_out, c_in = w1.shape[0], w1.shape[1]
    N, _, H, W = x_nchw.shape

    # Largest divisor of N that is <= batch_block: B_blk batch elements per grid step,
    # so each matmul has M = B_blk*H rows (fills the 128/256-row MXU far better than H).
    B_blk = 1
    for d in range(1, min(N, batch_block) + 1):
        if N % d == 0:
            B_blk = d
    M = B_blk * H

    # Fold BatchNorm (inference): scale -> banded-weight columns, shift -> lane-dense row.
    inv1 = g1 / jnp.sqrt(v1 + eps)
    inv2 = g2 / jnp.sqrt(v2 + eps)
    s1 = jnp.tile(inv1, W)                                        # (W*c_out,)
    s2 = jnp.tile(inv2, W)
    b1 = jnp.tile(be1 - m1 * inv1, W).reshape(1, W * c_out)
    b2 = jnp.tile(be2 - m2 * inv2, W).reshape(1, W * c_out)

    w1_b = _banded_conv_weight(w1, W) * s1[None, :]               # (3*W*c_in,  W*c_out)
    w2_b = _banded_conv_weight(w2, W) * s2[None, :]               # (3*W*c_out, W*c_out)

    # NCHW -> (N*H, W*c_in): channels minor, W folded into the lane axis, batch*H as rows.
    x_rows = (jnp.transpose(x_nchw, (0, 2, 3, 1))
              .astype(jnp.float32)
              .reshape(N * H, W * c_in))

    kernel = functools.partial(_double_conv_kernel, H=H)

    out_rows = pl.pallas_call(
        kernel,
        out_shape=jax.ShapeDtypeStruct((N * H, W * c_out), jnp.float32),
        grid_spec=pltpu.PrefetchScalarGridSpec(
            num_scalar_prefetch=0,
            grid=(N // B_blk,),
            in_specs=[
                pl.BlockSpec((M, W * c_in), lambda n: (n, 0)),
                pl.BlockSpec((3 * W * c_in, W * c_out), lambda n: (0, 0)),
                pl.BlockSpec((1, W * c_out), lambda n: (0, 0)),
                pl.BlockSpec((3 * W * c_out, W * c_out), lambda n: (0, 0)),
                pl.BlockSpec((1, W * c_out), lambda n: (0, 0)),
            ],
            out_specs=pl.BlockSpec((M, W * c_out), lambda n: (n, 0)),
        ),
        compiler_params=pltpu.CompilerParams(dimension_semantics=("parallel",)),
    )(x_rows, w1_b, b1, w2_b, b2)

    # (N*H, W*c_out) -> NCHW
    return jnp.transpose(out_rows.reshape(N, H, W, c_out), (0, 3, 1, 2))


def _reference(x_nchw, params):
    """Pure-JAX reference (lax conv) for correctness checking."""
    w1, g1, be1, m1, v1, w2, g2, be2, m2, v2 = params
    eps = 1e-5

    def conv(x, w):
        return jax.lax.conv_general_dilated(
            x, w, window_strides=(1, 1), padding='SAME',
            dimension_numbers=('NCHW', 'OIHW', 'NCHW'))

    def bn(x, g, b, m, v):
        return (x - m[None, :, None, None]) / jnp.sqrt(v[None, :, None, None] + eps) \
            * g[None, :, None, None] + b[None, :, None, None]

    y = jax.nn.relu(bn(conv(x_nchw, w1), g1, be1, m1, v1))
    y = jax.nn.relu(bn(conv(y, w2), g2, be2, m2, v2))
    return y


def make_params(key, in_channels, out_channels):
    ks = jax.random.split(key, 6)
    w1 = jax.random.normal(ks[0], (out_channels, in_channels, 3, 3), jnp.float32) * 0.2
    w2 = jax.random.normal(ks[1], (out_channels, out_channels, 3, 3), jnp.float32) * 0.2
    g1 = 1.0 + 0.1 * jax.random.normal(ks[2], (out_channels,), jnp.float32)
    be1 = 0.1 * jax.random.normal(ks[3], (out_channels,), jnp.float32)
    m1 = 0.05 * jax.random.normal(ks[4], (out_channels,), jnp.float32)
    v1 = 1.0 + 0.1 * jnp.abs(jax.random.normal(ks[5], (out_channels,), jnp.float32))
    g2 = jnp.flip(g1)
    be2 = -be1
    m2 = jnp.flip(m1)
    v2 = jnp.flip(v1)
    return (w1, g1, be1, m1, v1, w2, g2, be2, m2, v2)


if __name__ == "__main__":
    key = jax.random.PRNGKey(0)
    k_x, k_p = jax.random.split(key)

    N, C_IN, C_OUT, H, W = 2, 4, 8, 16, 16
    x = jax.random.normal(k_x, (N, C_IN, H, W), jnp.float32)
    params = make_params(k_p, C_IN, C_OUT)

    out = double_conv_pallas(x, params)
    out = jax.block_until_ready(out)

    ref = _reference(x, params)
    assert out.shape == (N, C_OUT, H, W)
    assert jnp.allclose(out, ref, atol=1e-4, rtol=1e-4), \
        f"max abs err {jnp.max(jnp.abs(out - ref))}"

    print("KERNEL_OK")
</pallas_src>

<mosaic_0001>
module attributes {stable_mosaic.version = 11 : i64} {
  func.func @_double_conv_kernel(%arg0: i32, %arg1: memref<32x64xf32, #tpu.memory_space<vmem>>, %arg2: memref<192x128xf32, #tpu.memory_space<vmem>>, %arg3: memref<1x128xf32, #tpu.memory_space<vmem>>, %arg4: memref<384x128xf32, #tpu.memory_space<vmem>>, %arg5: memref<1x128xf32, #tpu.memory_space<vmem>>, %arg6: memref<32x128xf32, #tpu.memory_space<vmem>>) attributes {dimension_semantics = [#tpu.dimension_semantics<parallel>], iteration_bounds = array<i64: 1>, scalar_prefetch = 0 : i64, scratch_operands = 0 : i64, tpu.core_type = #tpu.core_type<tc>, window_params = [{transform_indices = @transform_0, window_bounds = array<i64: 32, 64>}, {pipeline_mode = #tpu.pipeline_mode<synchronous>, transform_indices = @transform_1, window_bounds = array<i64: 192, 128>}, {pipeline_mode = #tpu.pipeline_mode<synchronous>, transform_indices = @transform_2, window_bounds = array<i64: 1, 128>}, {pipeline_mode = #tpu.pipeline_mode<synchronous>, transform_indices = @transform_3, window_bounds = array<i64: 384, 128>}, {pipeline_mode = #tpu.pipeline_mode<synchronous>, transform_indices = @transform_4, window_bounds = array<i64: 1, 128>}, {transform_indices = @transform_5, window_bounds = array<i64: 32, 128>}]} {
    %0 = tpu.iota {dimensions = array<i32: 0>} : vector<32x1xi32>
    %c16_i32 = arith.constant 16 : i32
    %c0_i32 = arith.constant 0 : i32
    %1 = arith.cmpi eq, %c16_i32, %c0_i32 : i32
    %c1_i32 = arith.constant 1 : i32
    %2 = arith.select %1, %c1_i32, %c16_i32 : i32
    %3 = vector.broadcast %2 : i32 to vector<32x1xi32>
    %4 = arith.remsi %0, %3 : vector<32x1xi32>
    %c0_i32_0 = arith.constant 0 : i32
    %5 = vector.broadcast %c0_i32_0 : i32 to vector<32x1xi32>
    %6 = arith.cmpi ne, %4, %5 : vector<32x1xi32>
    %c0_i32_1 = arith.constant 0 : i32
    %7 = vector.broadcast %c0_i32_1 : i32 to vector<32x1xi32>
    %8 = arith.cmpi slt, %4, %7 : vector<32x1xi32>
    %c0_i32_2 = arith.constant 0 : i32
    %9 = arith.cmpi slt, %2, %c0_i32_2 : i32
    %10 = vector.broadcast %9 : i1 to vector<32x1xi1>
    %11 = vector.broadcast %10 : vector<32x1xi1> to vector<32x1xi1>
    %12 = arith.xori %8, %11 : vector<32x1xi1>
    %13 = arith.andi %12, %6 : vector<32x1xi1>
    %14 = vector.broadcast %2 : i32 to vector<32x1xi32>
    %15 = arith.addi %4, %14 : vector<32x1xi32>
    %16 = arith.select %13, %15, %4 : vector<32x1xi1>, vector<32x1xi32>
    %c0_i32_3 = arith.constant 0 : i32
    %17 = vector.broadcast %c0_i32_3 : i32 to vector<32x1xi32>
    %18 = arith.cmpi eq, %16, %17 : vector<32x1xi32>
    %c15_i32 = arith.constant 15 : i32
    %19 = vector.broadcast %c15_i32 : i32 to vector<32x1xi32>
    %20 = arith.cmpi eq, %16, %19 : vector<32x1xi32>
    %c0 = arith.constant 0 : index
    %c0_4 = arith.constant 0 : index
    %21 = vector.load %arg1[%c0, %c0_4] : memref<32x64xf32, #tpu.memory_space<vmem>>, vector<32x64xf32>
    %cst = arith.constant 0.000000e+00 : f32
    %22 = vector.broadcast %cst : f32 to vector<1x64xf32>
    %23 = vector.extract_strided_slice %21 {offsets = [0, 0], sizes = [31, 64], strides = [1, 1]} : vector<32x64xf32> to vector<31x64xf32>
    %24 = tpu.concatenate %22, %23 in 0 : vector<1x64xf32>, vector<31x64xf32> -> vector<32x64xf32>
    %cst_5 = arith.constant 0.000000e+00 : f32
    %25 = vector.shape_cast %18 : vector<32x1xi1> to vector<32x1xi1>
    %26 = vector.broadcast %25 : vector<32x1xi1> to vector<32x64xi1>
    %27 = vector.broadcast %cst_5 : f32 to vector<32x64xf32>
    %28 = arith.select %26, %27, %24 : vector<32x64xi1>, vector<32x64xf32>
    %29 = vector.extract_strided_slice %21 {offsets = [1, 0], sizes = [31, 64], strides = [1, 1]} : vector<32x64xf32> to vector<31x64xf32>
    %30 = tpu.concatenate %29, %22 in 0 : vector<31x64xf32>, vector<1x64xf32> -> vector<32x64xf32>
    %cst_6 = arith.constant 0.000000e+00 : f32
    %31 = vector.shape_cast %20 : vector<32x1xi1> to vector<32x1xi1>
    %32 = vector.broadcast %31 : vector<32x1xi1> to vector<32x64xi1>
    %33 = vector.broadcast %cst_6 : f32 to vector<32x64xf32>
    %34 = arith.select %32, %33, %30 : vector<32x64xi1>, vector<32x64xf32>
    %35 = tpu.concatenate %28, %21, %34 in 1 : vector<32x64xf32>, vector<32x64xf32>, vector<32x64xf32> -> vector<32x192xf32>
    %c0_7 = arith.constant 0 : index
    %c0_8 = arith.constant 0 : index
    %36 = vector.load %arg2[%c0_7, %c0_8] : memref<192x128xf32, #tpu.memory_space<vmem>>, vector<192x128xf32>
    %cst_9 = arith.constant dense<0.000000e+00> : vector<32x128xf32>
    %37 = tpu.matmul %35, %36, %cst_9 {dimension_numbers = #tpu.dot_dimension_numbers<[1], [0], [0], [1], [0, 0, 1, 1], [], []>} : vector<32x192xf32>, vector<192x128xf32>, vector<32x128xf32> -> vector<32x128xf32>
    %c0_10 = arith.constant 0 : index
    %c0_11 = arith.constant 0 : index
    %38 = vector.load %arg3[%c0_10, %c0_11] : memref<1x128xf32, #tpu.memory_space<vmem>>, vector<1x128xf32>
    %39 = vector.broadcast %38 : vector<1x128xf32> to vector<32x128xf32>
    %40 = arith.addf %37, %39 : vector<32x128xf32>
    %cst_12 = arith.constant 0.000000e+00 : f32
    %41 = vector.broadcast %cst_12 : f32 to vector<32x128xf32>
    %42 = arith.maximumf %40, %41 : vector<32x128xf32>
    %cst_13 = arith.constant 0.000000e+00 : f32
    %43 = vector.broadcast %cst_13 : f32 to vector<1x128xf32>
    %44 = vector.extract_strided_slice %42 {offsets = [0, 0], sizes = [31, 128], strides = [1, 1]} : vector<32x128xf32> to vector<31x128xf32>
    %45 = tpu.concatenate %43, %44 in 0 : vector<1x128xf32>, vector<31x128xf32> -> vector<32x128xf32>
    %cst_14 = arith.constant 0.000000e+00 : f32
    %46 = vector.shape_cast %18 : vector<32x1xi1> to vector<32x1xi1>
    %47 = vector.broadcast %46 : vector<32x1xi1> to vector<32x128xi1>
    %48 = vector.broadcast %cst_14 : f32 to vector<32x128xf32>
    %49 = arith.select %47, %48, %45 : vector<32x128xi1>, vector<32x128xf32>
    %50 = vector.extract_strided_slice %42 {offsets = [1, 0], sizes = [31, 128], strides = [1, 1]} : vector<32x128xf32> to vector<31x128xf32>
    %51 = tpu.concatenate %50, %43 in 0 : vector<31x128xf32>, vector<1x128xf32> -> vector<32x128xf32>
    %cst_15 = arith.constant 0.000000e+00 : f32
    %52 = vector.shape_cast %20 : vector<32x1xi1> to vector<32x1xi1>
    %53 = vector.broadcast %52 : vector<32x1xi1> to vector<32x128xi1>
    %54 = vector.broadcast %cst_15 : f32 to vector<32x128xf32>
    %55 = arith.select %53, %54, %51 : vector<32x128xi1>, vector<32x128xf32>
    %56 = tpu.concatenate %49, %42, %55 in 1 : vector<32x128xf32>, vector<32x128xf32>, vector<32x128xf32> -> vector<32x384xf32>
    %c0_16 = arith.constant 0 : index
    %c0_17 = arith.constant 0 : index
    %57 = vector.load %arg4[%c0_16, %c0_17] : memref<384x128xf32, #tpu.memory_space<vmem>>, vector<384x128xf32>
    %cst_18 = arith.constant dense<0.000000e+00> : vector<32x128xf32>
    %58 = tpu.matmul %56, %57, %cst_18 {dimension_numbers = #tpu.dot_dimension_numbers<[1], [0], [0], [1], [0, 0, 1, 1], [], []>} : vector<32x384xf32>, vector<384x128xf32>, vector<32x128xf32> -> vector<32x128xf32>
    %c0_19 = arith.constant 0 : index
    %c0_20 = arith.constant 0 : index
    %59 = vector.load %arg5[%c0_19, %c0_20] : memref<1x128xf32, #tpu.memory_space<vmem>>, vector<1x128xf32>
    %60 = vector.broadcast %59 : vector<1x128xf32> to vector<32x128xf32>
    %61 = arith.addf %58, %60 : vector<32x128xf32>
    %cst_21 = arith.constant 0.000000e+00 : f32
    %62 = vector.broadcast %cst_21 : f32 to vector<32x128xf32>
    %63 = arith.maximumf %61, %62 : vector<32x128xf32>
    %c0_22 = arith.constant 0 : index
    %c0_23 = arith.constant 0 : index
    %64 = vector.load %arg6[%c0_22, %c0_23] : memref<32x128xf32, #tpu.memory_space<vmem>>, vector<32x128xf32>
    tpu.vector_store %arg6[%c0_22, %c0_23], %63 {strides = array<i32>} : memref<32x128xf32, #tpu.memory_space<vmem>>, vector<32x128xf32>,
    return
  }
  func.func @transform_0(%arg0: i32) -> (i32, i32) {
    %c0_i32 = arith.constant 0 : i32
    %c0_i32_0 = arith.constant 0 : i32
    return %arg0, %c0_i32 : i32, i32
  }
  func.func @transform_1(%arg0: i32) -> (i32, i32) {
    %c0_i32 = arith.constant 0 : i32
    %c0_i32_0 = arith.constant 0 : i32
    %c0_i32_1 = arith.constant 0 : i32
    return %c0_i32, %c0_i32_0 : i32, i32
  }
  func.func @transform_2(%arg0: i32) -> (i32, i32) {
    %c0_i32 = arith.constant 0 : i32
    %c0_i32_0 = arith.constant 0 : i32
    %c0_i32_1 = arith.constant 0 : i32
    return %c0_i32, %c0_i32_0 : i32, i32
  }
  func.func @transform_3(%arg0: i32) -> (i32, i32) {
    %c0_i32 = arith.constant 0 : i32
    %c0_i32_0 = arith.constant 0 : i32
    %c0_i32_1 = arith.constant 0 : i32
    return %c0_i32, %c0_i32_0 : i32, i32
  }
  func.func @transform_4(%arg0: i32) -> (i32, i32) {
    %c0_i32 = arith.constant 0 : i32
    %c0_i32_0 = arith.constant 0 : i32
    %c0_i32_1 = arith.constant 0 : i32
    return %c0_i32, %c0_i32_0 : i32, i32
  }
  func.func @transform_5(%arg0: i32) -> (i32, i32) {
    %c0_i32 = arith.constant 0 : i32
    %c0_i32_0 = arith.constant 0 : i32
    return %arg0, %c0_i32 : i32, i32
  }
}

</mosaic_0001>

<bundles_post_ra>
// kernel: tpu_custom_call.1
= control target key start
LH: loop header
LB: loop body
LE: loop exit
PB: predicated region body
PF: predicated region fallthrough
CT: control target
= control target key end

     0   :  { %10 = vsyncpa [#allocation3], 0  ;;  %s800_s0 = inlined_call_operand.hbm [shape: f32[32,64], index: 0, kind: input, shape index: {}]   ;;  %s801_s1 = inlined_call_operand.hbm [shape: f32[192,128], index: 1, kind: input, shape index: {}]   ;;  %s802_s2 = inlined_call_operand.vmem [shape: f32[1,128], index: 2, kind: input, shape index: {}]   ;;  %s803_s3 = inlined_call_operand.hbm [shape: f32[384,128], index: 3, kind: input, shape index: {}]   ;;  %s804_s4 = inlined_call_operand.vmem [shape: f32[1,128], index: 4, kind: input, shape index: {}]   ;;  %s805_s5 = inlined_call_operand.hbm [shape: f32[32,128], index: 5, kind: output, shape index: {}]  }
   0x1   :  { %11 = vsyncpa [#allocation6], 0 }
   0x2   :  { %12 = vsyncpa [#allocation4], 0  ;;  %s30_s20 = sshll.u32 %s801_s1, 4  ;;  %s648_s21 = smov [#allocation5]   ;;  %s31_s20 = int_to_ptr.hbm [resolvable:$true] %s30_s20 }
   0x3   :  { %s32_s22 = sshll.u32 %s648_s21, 4  ;;  %s17_s25 = sshll.u32 %s800_s0, 4  ;;  %s33_s22 = int_to_ptr.vmem [resolvable:$true] %s32_s22  ;;  %s18_s25 = int_to_ptr.hbm [resolvable:$true] %s17_s25 }
   0x4   :  { %s649_s26 = smov 128   ;;  %s650_s27 = smov 8  }
   0x5   :  { %38 = dma.hbm_to_vmem [thread:$0]  %s31_s20, 3072, %s33_s22, [#allocation6], %s649_s26, %s649_s26, %s650_s27  }
   0x6   :  { %s651_s28 = smov [#allocation2]   ;;  %s45_s1 = sshll.u32 %s803_s3, 4  ;;  %s46_s1 = int_to_ptr.hbm [resolvable:$true] %s45_s1 }
   0x7   :  { %s19_s29 = sshll.u32 %s651_s28, 4  ;;  %s652_s0 = smov [#allocation7]   ;;  %s20_s29 = int_to_ptr.vmem [resolvable:$true] %s19_s29 }
   0x8   :  { %25 = dma.hbm_to_vmem [thread:$0]  %s18_s25, 512, %s20_s29, [#allocation3], %s649_s26, %s649_s26, %s650_s27  }
   0x9   :  { %s47_s7 = sshll.u32 %s652_s0, 4  ;;  %s48_s7 = int_to_ptr.vmem [resolvable:$true] %s47_s7 }
   0xa   :  { %53 = dma.hbm_to_vmem [thread:$0]  %s46_s1, 6144, %s48_s7, [#allocation6], %s649_s26, %s649_s26, %s650_s27  }
   0xb   :  { %642 = dma.done.wait [#allocation3], 512  }
   0xc   :  { %643 = vsyncadd [#allocation3], 4294966784 }
   0xd   :  { %644 = dma.done.wait [#allocation6], 9216  }
   0xe   :  { %645 = vsyncadd [#allocation6], 4294958080  ;;  %v703_v0 = vld [vmem:[#allocation2] sm:$0xff]  ;;  %v705_v1 = vld [vmem:[#allocation2 + $0x10] sm:$0xff]  ;;  %s653_s3 = smov 64   ;;  %v68_v29 = vlaneseq  ;;  %vm162_vm0 = vcmask 1046528  }
   0xf   :  { %187 = vrot.lane.b32.xlu0 %v703_v0, %s653_s3  ;;  %191 = vrot.lane.b32.xlu1 %v705_v1, %s653_s3  ;;  %v219_v2 = vld [vmem:[#allocation5 + $0x78] sm:$0xff]  ;;  %v218_v3 = vld [vmem:[#allocation5 + $0x70] sm:$0xff]  ;;  %v217_v4 = vld [vmem:[#allocation5 + $0x68] sm:$0xff]  ;;  %v163_v25 = vrot.slane %v703_v0, 1  ;;  %vm199_vm1 = vcmask 523264   ;;  %v138_v34 = vrot.slane %v703_v0, 7 }
  0x10   :  { %244 = vmatpush.msra.mxu0 %v219_v2  ;;  %v216_v5 = vld [vmem:[#allocation5 + $0x60] sm:$0xff]  ;;  %v227_v6 = vld [vmem:[#allocation5 + $0xb8] sm:$0xff]  ;;  %v709_v7 = vld [vmem:[#allocation2 + $0x8] sm:$0xff]  ;;  %v69_v33 = vshrl.u32 %v68_v29, 7  ;;  %v141_v35 = vrot.slane %v705_v1, 7  ;;  %v166_v36 = vrot.slane %v705_v1, 1 }
  0x11   :  { %v711_v8 = vld [vmem:[#allocation2 + $0x18] sm:$0xff]  ;;  %281 = vmatpush.msra.mxu1 %v227_v6  ;;  %v226_v9 = vld [vmem:[#allocation5 + $0xb0] sm:$0xff]  ;;  %v225_v11 = vld [vmem:[#allocation5 + $0xa8] sm:$0xff]  ;;  %v164_v26 = vrot.slane %v709_v7, 1  ;;  %v139_v32 = vrot.slane %v709_v7, 7  ;;  %vm137_vm2 = vcmask 1040384  }
  0x12   :  { %245 = vmatpush.msra.mxu0 %v218_v3  ;;  %v215_v10 = vld [vmem:[#allocation5 + $0x58] sm:$0xff]  ;;  %v214_v12 = vld [vmem:[#allocation5 + $0x50] sm:$0xff]  ;;  %v224_v13 = vld [vmem:[#allocation5 + $0xa0] sm:$0xff]  ;;  %v70_v37 = vadd.s32 8, %v69_v33  ;;  %v143_v44 = vrot.slane %v711_v8, 7  ;;  %v168_v45 = vrot.slane %v711_v8, 1 }
  0x13   :  { %282 = vmatpush.msra.mxu1 %v226_v9  ;;  %v213_v14 = vld [vmem:[#allocation5 + $0x48] sm:$0xff]  ;;  %v223_v15 = vld [vmem:[#allocation5 + $0x98] sm:$0xff]  ;;  %v212_v16 = vld [vmem:[#allocation5 + $0x40] sm:$0xff]  ;;  %v165_v31 = vsel %vm162_vm0, %v163_v25, %v164_v26  ;;  %v724_v38 = vsel %vm137_vm2, %v138_v34, %v139_v32  ;;  %v167_v41 = vsel %vm162_vm0, %v164_v26, %v166_v36  ;;  %v732_v42 = vsel %vm137_vm2, %v139_v32, %v141_v35  ;;  %s495_s14 = sshll.u32 %s805_s5, 4  ;;  %s496_s14 = int_to_ptr.hbm [resolvable:$true] %s495_s14 }
  0x14   :  { %246 = vmatpush.msra.mxu0 %v217_v4  ;;  %v222_v17 = vld [vmem:[#allocation5 + $0x90] sm:$0xff]  ;;  %v211_v18 = vld [vmem:[#allocation5 + $0x38] sm:$0xff]  ;;  %v209_v20 = vld [vmem:[#allocation5 + $0x28] sm:$0xff]  ;;  %v84_v39 = vand.u32 15, %v70_v37  ;;  %v169_v46 = vsel %vm162_vm0, %v166_v36, %v168_v45  ;;  %v741_v47 = vsel %vm137_vm2, %v141_v35, %v143_v44  ;;  %v72_v48 = vadd.s32 24, %v69_v33 }
  0x15   :  { %283 = vmatpush.msra.mxu1 %v225_v11  ;;  %v210_v19 = vld [vmem:[#allocation5 + $0x30] sm:$0xff]  ;;  %v208_v21 = vld [vmem:[#allocation5 + $0x20] sm:$0xff]  ;;  %v207_v22 = vld [vmem:[#allocation5 + $0x18] sm:$0xff]  ;;  %v77_v49 = vand.u32 15, %v69_v33  ;;  %v174_v52 = vsel %vm162_vm0, %v168_v45, 0.0  ;;  %v149_v57 = vsel %vm137_vm2, 0.0, %v138_v34 }
  0x16   :  { %247 = vmatpush.msra.mxu0 %v216_v5  ;;  %v206_v23 = vld [vmem:[#allocation5 + $0x10] sm:$0xff]  ;;  %v205_v24 = vld [vmem:[#allocation5 + $0x8] sm:$0xff]  ;;  %v204_v27 = vld [vmem:[#allocation5] sm:$0xff]  ;;  %vm726_vm3 = vcmp.eq.s32.totalorder %v84_v39, 15  ;;  %v98_v50 = vand.u32 15, %v72_v48 }
  0x17   :  { %189 = vrot.lane.b32.xlu0 %v709_v7, %s653_s3  ;;  %193 = vrot.lane.b32.xlu1 %v711_v8, %s653_s3  ;;  %v221_v28 = vld [vmem:[#allocation5 + $0x88] sm:$0xff]  ;;  %v220_v30 = vld [vmem:[#allocation5 + $0x80] sm:$0xff]  ;;  %v184_v43 = vsel %vm726_vm3, 0.0, %v167_v41  ;;  %v373_v53 = vld [vmem:[#allocation7 + $0xf8] sm:$0xff]  ;;  %vm749_vm5 = vcmp.eq.s32.totalorder %v77_v49, 0  ;;  %v71_v7 = vadd.s32 16, %v69_v33 }
  0x18   :  { %248 = vmatpush.msra.mxu0 %v215_v10  ;;  %284 = vmatpush.msra.mxu1 %v224_v13  ;;  %vm744_vm4 = vcmp.eq.s32.totalorder %v98_v50, 15  ;;  %v372_v54 = vld [vmem:[#allocation7 + $0xf0] sm:$0xff]  ;;  %v357_v55 = vld [vmem:[#allocation7 + $0x78] sm:$0xff]  ;;  %v371_v60 = vld [vmem:[#allocation7 + $0xe8] sm:$0xff]  ;;  %v158_v63 = vsel %vm749_vm5, 0.0, %v149_v57 }
  0x19   :  { %v186_v58 = vsel %vm744_vm4, 0.0, %v174_v52  ;;  %423 = vmatpush.msra.mxu3 %v373_v53  ;;  %394 = vmatpush.msra.mxu2 %v357_v55  ;;  %v356_v59 = vld [vmem:[#allocation7 + $0x70] sm:$0xff]  ;;  %v355_v61 = vld [vmem:[#allocation7 + $0x68] sm:$0xff]  ;;  %v389_v62 = vld [vmem:[#allocation7 + $0x178] sm:$0xff] }
  0x1a   :  { %249 = vmatpush.msra.mxu0 %v214_v12  ;;  %285 = vmatpush.msra.mxu1 %v223_v15  ;;  %v370_v0 = vld [vmem:[#allocation7 + $0xe0] sm:$0xff]  ;;  %v388_v2 = vld [vmem:[#allocation7 + $0x170] sm:$0xff]  ;;  %v369_v4 = vld [vmem:[#allocation7 + $0xd8] sm:$0xff] }
  0x1b   :  { %424 = vmatpush.msra.mxu3 %v372_v54  ;;  %395 = vmatpush.msra.mxu2 %v356_v59  ;;  %v354_v1 = vld [vmem:[#allocation7 + $0x60] sm:$0xff]  ;;  %v353_v5 = vld [vmem:[#allocation7 + $0x58] sm:$0xff]  ;;  %v387_v8 = vld [vmem:[#allocation7 + $0x168] sm:$0xff] }
  0x1c   :  { %250 = vmatpush.msra.mxu0 %v213_v14  ;;  %286 = vmatpush.msra.mxu1 %v222_v17  ;;  %v368_v9 = vld [vmem:[#allocation7 + $0xd0] sm:$0xff]  ;;  %v386_v11 = vld [vmem:[#allocation7 + $0x160] sm:$0xff]  ;;  %v367_v12 = vld [vmem:[#allocation7 + $0xc8] sm:$0xff]  ;;  %v91_v14 = vand.u32 15, %v71_v7 }
  0x1d   :  { %425 = vmatpush.msra.mxu3 %v371_v60  ;;  %396 = vmatpush.msra.mxu2 %v355_v61  ;;  %v352_v10 = vld [vmem:[#allocation7 + $0x50] sm:$0xff]  ;;  %v351_v13 = vld [vmem:[#allocation7 + $0x48] sm:$0xff]  ;;  %v385_v15 = vld [vmem:[#allocation7 + $0x158] sm:$0xff] }
  0x1e   :  { %251 = vmatpush.msra.mxu0 %v212_v16  ;;  %287 = vmatpush.msra.mxu1 %v221_v28  ;;  %v366_v16 = vld [vmem:[#allocation7 + $0xc0] sm:$0xff]  ;;  %vm762_vm6 = vcmp.eq.s32.totalorder %v91_v14, 0  ;;  %v364_v26 = vld [vmem:[#allocation7 + $0xb0] sm:$0xff]  ;;  %v363_v29 = vld [vmem:[#allocation7 + $0xa8] sm:$0xff] }
  0x1f   :  { %426 = vmatpush.msra.mxu3 %v370_v0  ;;  %397 = vmatpush.msra.mxu2 %v354_v1  ;;  %v350_v17 = vld [vmem:[#allocation7 + $0x40] sm:$0xff]  ;;  %v160_v28 = vsel %vm762_vm6, 0.0, %v732_v42  ;;  %v361_v35 = vld [vmem:[#allocation7 + $0x98] sm:$0xff]  ;;  %v359_v42 = vld [vmem:[#allocation7 + $0x88] sm:$0xff] }
  0x20   :  { %252 = vmatpush.msra.mxu0 %v211_v18  ;;  %288 = vmatpush.msra.mxu1 %v220_v30  ;;  %v384_v18 = vld [vmem:[#allocation7 + $0x150] sm:$0xff]  ;;  %v347_v30 = vld [vmem:[#allocation7 + $0x28] sm:$0xff]  ;;  %v346_v36 = vld [vmem:[#allocation7 + $0x20] sm:$0xff] }
  0x21   :  { %509 = vmatmul.msk.f32.vlgmr.msra.gmra.mxu1 %vm199_vm1, %v165_v31  ;;  %427 = vmatpush.msra.mxu3 %v369_v4  ;;  %v362_v31 = vld [vmem:[#allocation7 + $0xa0] sm:$0xff]  ;;  %v345_v39 = vld [vmem:[#allocation7 + $0x18] sm:$0xff]  ;;  %v380_v44 = vld [vmem:[#allocation7 + $0x130] sm:$0xff] }
  0x22   :  { %253 = vmatpush.msra.mxu0 %v210_v19  ;;  %521 = vmatpush.msrb.mxu1 %v389_v62  ;;  %v382_v37 = vld [vmem:[#allocation7 + $0x140] sm:$0xff]  ;;  %v381_v41 = vld [vmem:[#allocation7 + $0x138] sm:$0xff]  ;;  %v376_v52 = vld [vmem:[#allocation7 + $0x110] sm:$0xff] }
  0x23   :  { %398 = vmatpush.msra.mxu2 %v353_v5  ;;  %428 = vmatpush.msra.mxu3 %v368_v9  ;;  %v358_v45 = vld [vmem:[#allocation7 + $0x80] sm:$0xff]  ;;  %v377_v50 = vld [vmem:[#allocation7 + $0x118] sm:$0xff]  ;;  %v375_v53 = vld [vmem:[#allocation7 + $0x108] sm:$0xff] }
  0x24   :  { %254 = vmatpush.msra.mxu0 %v209_v20  ;;  %522 = vmatpush.msrb.mxu1 %v388_v2  ;;  %v365_v20 = vld [vmem:[#allocation7 + $0xb8] sm:$0xff]  ;;  %v342_v48 = vld [vmem:[#allocation7] sm:$0xff]  ;;  %vm513_vm7 = vmneg %vm749_vm5 }
  0x25   :  { %399 = vmatpush.msra.mxu2 %v352_v10  ;;  %429 = vmatpush.msra.mxu3 %v367_v12  ;;  %v378_v49 = vld [vmem:[#allocation7 + $0x120] sm:$0xff]  ;;  %vm515_vm8 = vmneg %vm762_vm6 }
  0x26   :  { %255 = vmatpush.msra.mxu0 %v208_v21  ;;  %523 = vmatpush.msrb.mxu1 %v387_v8  ;;  %v349_v21 = vld [vmem:[#allocation7 + $0x38] sm:$0xff]  ;;  %v374_v54 = vld [vmem:[#allocation7 + $0x100] sm:$0xff]  ;;  %vm517_vm9 = vmneg %vm726_vm3 }
  0x27   :  { %400 = vmatpush.msra.mxu2 %v351_v13  ;;  %430 = vmatpush.msra.mxu3 %v366_v16  ;;  %v544_v57 = vld [vmem:[%s802_s2] ss:$0 sm:$0xff]  ;;  %vm519_vm10 = vmneg %vm744_vm4 }
  0x28   :  { %256 = vmatpush.msra.mxu0 %v207_v22  ;;  %524 = vmatpush.msrb.mxu1 %v386_v11 }
  0x29   :  { %510 = vmatmul.msk.f32.gmra.mxu1 %vm199_vm1, %v184_v43  ;;  %401 = vmatpush.msra.mxu2 %v350_v17  ;;  %v344_v43 = vld [vmem:[#allocation7 + $0x10] sm:$0xff] }
  0x2a   :  { %257 = vmatpush.msra.mxu0 %v206_v23  ;;  %525 = vmatpush.msrb.mxu1 %v385_v15 }
  0x2b   :  { %431 = vmatpush.msra.mxu3 %v365_v20  ;;  %402 = vmatpush.msra.mxu2 %v349_v21 }
  0x2c   :  { %258 = vmatpush.msra.mxu0 %v205_v24  ;;  %526 = vmatpush.msrb.mxu1 %v384_v18  ;;  %v383_v24 = vld [vmem:[#allocation7 + $0x148] sm:$0xff] }
  0x2d   :  { %432 = vmatpush.msra.mxu3 %v364_v26 }
  0x2e   :  { %259 = vmatpush.msra.mxu0 %v204_v27  ;;  %v348_v27 = vld [vmem:[#allocation7 + $0x30] sm:$0xff]  ;;  %527 = vmatpush.msrb.mxu1 %v383_v24 }
  0x2f   :  { %403 = vmatpush.msra.mxu2 %v348_v27  ;;  %433 = vmatpush.msra.mxu3 %v363_v29 }
  0x30   :  { %452 = vmatpush.msrb.mxu0 %v389_v62  ;;  %528 = vmatpush.msrb.mxu1 %v382_v37 }
  0x31   :  { %511 = vmatmul.msk.f32.gmra.mxu1 %vm199_vm1, %v169_v46  ;;  %404 = vmatpush.msra.mxu2 %v347_v30  ;;  %v343_v46 = vld [vmem:[#allocation7 + $0x8] sm:$0xff] }
  0x32   :  { %453 = vmatpush.msrb.mxu0 %v388_v2  ;;  %434 = vmatpush.msra.mxu3 %v362_v31 }
  0x33   :  { %405 = vmatpush.msra.mxu2 %v346_v36  ;;  %529 = vmatpush.msrb.mxu1 %v381_v41 }
  0x34   :  { %454 = vmatpush.msrb.mxu0 %v387_v8  ;;  %435 = vmatpush.msra.mxu3 %v361_v35 }
  0x35   :  { %406 = vmatpush.msra.mxu2 %v345_v39  ;;  %530 = vmatpush.msrb.mxu1 %v380_v44 }
  0x36   :  { %455 = vmatpush.msrb.mxu0 %v386_v11 }
  0x37   :  { %407 = vmatpush.msra.mxu2 %v344_v43 }
  0x38   :  { %456 = vmatpush.msrb.mxu0 %v385_v15 }
  0x39   :  { %512 = vmatmul.msk.f32.gmra.mxu1 %vm199_vm1, %v186_v58  ;;  %408 = vmatpush.msra.mxu2 %v343_v46 }
  0x3a   :  { %457 = vmatpush.msrb.mxu0 %v384_v18 }
  0x3b   :  { %409 = vmatpush.msra.mxu2 %v342_v48 }
  0x3c   :  { %458 = vmatpush.msrb.mxu0 %v383_v24 }
  0x3e   :  { %459 = vmatpush.msrb.mxu0 %v382_v37 }
  0x40   :  { %460 = vmatpush.msrb.mxu0 %v381_v41 }
  0x42   :  { %461 = vmatpush.msrb.mxu0 %v380_v44 }
  0x81   :  { %v188_v3 = vpop.permute.xlu0 %187  ;;  %v192_v25 = vpop.permute.xlu1 %191 }
  0x82   :  { %v200_v6 = vsel %vm199_vm1, %v158_v63, %v188_v3  ;;  %v202_v32 = vsel %vm199_vm1, %v160_v28, %v192_v25  ;;  %v545_v28 = vld [vmem:[%s804_s4] ss:$0 sm:$0xff]  ;;  %s654_s4 = smov [#allocation8]  }
  0x83   :  { %260 = vmatmul.f32.vlgmr.msra.gmra.mxu0 %v200_v6  ;;  %s493_s11 = sshll.u32 %s654_s4, 4  ;;  %s494_s11 = int_to_ptr.vmem [resolvable:$true] %s493_s11 }
  0x89   :  { %v190_v19 = vpop.permute.xlu0 %189  ;;  %v194_v33 = vpop.permute.xlu1 %193 }
  0x8a   :  { %v201_v22 = vsel %vm199_vm1, %v724_v38, %v190_v19  ;;  %v203_v34 = vsel %vm199_vm1, %v741_v47, %v194_v33  ;;  %v360_v38 = vld [vmem:[#allocation7 + $0x90] sm:$0xff]  ;;  %v379_v47 = vld [vmem:[#allocation7 + $0x128] sm:$0xff] }
  0x8b   :  { %263 = vmatmul.f32.gmra.mxu0 %v201_v22  ;;  %436 = vmatpush.msra.mxu3 %v360_v38 }
  0x8c   :  { %462 = vmatpush.msrb.mxu0 %v379_v47  ;;  %531 = vmatpush.msrb.mxu1 %v379_v47 }
  0x8d   :  { %437 = vmatpush.msra.mxu3 %v359_v42 }
  0x8e   :  { %463 = vmatpush.msrb.mxu0 %v378_v49  ;;  %532 = vmatpush.msrb.mxu1 %v378_v49 }
  0x8f   :  { %438 = vmatpush.msra.mxu3 %v358_v45 }
  0x90   :  { %464 = vmatpush.msrb.mxu0 %v377_v50  ;;  %533 = vmatpush.msrb.mxu1 %v377_v50 }
  0x92   :  { %465 = vmatpush.msrb.mxu0 %v376_v52  ;;  %534 = vmatpush.msrb.mxu1 %v376_v52 }
  0x93   :  { %266 = vmatmul.f32.gmra.mxu0 %v202_v32 }
  0x94   :  { %466 = vmatpush.msrb.mxu0 %v375_v53  ;;  %535 = vmatpush.msrb.mxu1 %v375_v53 }
  0x96   :  { %467 = vmatpush.msrb.mxu0 %v374_v54  ;;  %536 = vmatpush.msrb.mxu1 %v374_v54 }
  0x9b   :  { %269 = vmatmul.f32.gmra.mxu0 %v203_v34 }
  0x9e   :  { %v290_v55 = vpop.f32.mrf.mxu1 }
  0xa6   :  { %v293_v61 = vpop.f32.mrf.mxu1 }
  0xae   :  { %v296_v5 = vpop.f32.mrf.mxu1 }
  0xb6   :  { %v299_v17 = vpop.f32.mrf.mxu1 }
 0x100   :  { %v261_v58 = vpop.f32.mrf.mxu0 }
 0x101   :  { %v262_v59 = vadd.f32 %v544_v57, %v261_v58 }
 0x103   :  { %v291_v60 = vadd.f32 %v290_v55, %v262_v59 }
 0x105   :  { %v302_v62 = vmax.f32 %v291_v60, 0.0 }
 0x107   :  { %439 = vmatmul.f32.vlgmr.msra.gmra.mxu3 %v302_v62  ;;  %v310_v63 = vrot.slane %v302_v62, 7  ;;  %v326_v6 = vrot.slane %v302_v62, 1 }
 0x108   :  { %v264_v0 = vpop.f32.mrf.mxu0 }
 0x109   :  { %v265_v1 = vadd.f32 %v544_v57, %v264_v0  ;;  %v321_v2 = vsel %vm137_vm2, 0.0, %v310_v63 }
 0x10a   :  { %514 = vmatmul.msk.f32.vlgmr.msra.gmra.mxu2 %vm513_vm7, %v321_v2 }
 0x10b   :  { %v294_v3 = vadd.f32 %v293_v61, %v265_v1 }
 0x10d   :  { %v303_v4 = vmax.f32 %v294_v3, 0.0 }
 0x10f   :  { %v327_v7 = vrot.slane %v303_v4, 1  ;;  %442 = vmatmul.f32.gmra.mxu3 %v303_v4  ;;  %v311_v8 = vrot.slane %v303_v4, 7 }
 0x110   :  { %v267_v9 = vpop.f32.mrf.mxu0 }
 0x111   :  { %v268_v10 = vadd.f32 %v544_v57, %v267_v9  ;;  %v312_v11 = vsel %vm137_vm2, %v310_v63, %v311_v8  ;;  %v328_v12 = vsel %vm162_vm0, %v326_v6, %v327_v7 }
 0x112   :  { %413 = vmatmul.f32.gmra.mxu2 %v312_v11  ;;  %468 = vmatmul.f32.vlgmr.msrb.gmra.mxu0 %v328_v12 }
 0x113   :  { %v297_v56 = vadd.f32 %v296_v5, %v268_v10 }
 0x115   :  { %v304_v13 = vmax.f32 %v297_v56, 0.0 }
 0x117   :  { %v313_v14 = vrot.slane %v304_v13, 7  ;;  %v329_v15 = vrot.slane %v304_v13, 1  ;;  %445 = vmatmul.f32.gmra.mxu3 %v304_v13 }
 0x118   :  { %v270_v16 = vpop.f32.mrf.mxu0 }
 0x119   :  { %v271_v18 = vadd.f32 %v544_v57, %v270_v16  ;;  %v314_v19 = vsel %vm137_vm2, %v311_v8, %v313_v14  ;;  %v330_v20 = vsel %vm162_vm0, %v327_v7, %v329_v15 }
 0x11a   :  { %516 = vmatmul.msk.f32.gmra.mxu2 %vm515_vm8, %v314_v19  ;;  %518 = vmatmul.msk.f32.vlgmr.msrb.gmra.mxu1 %vm517_vm9, %v330_v20 }
 0x11b   :  { %v300_v21 = vadd.f32 %v299_v17, %v271_v18 }
 0x11d   :  { %v305_v22 = vmax.f32 %v300_v21, 0.0 }
 0x11f   :  { %448 = vmatmul.f32.gmra.mxu3 %v305_v22  ;;  %v315_v23 = vrot.slane %v305_v22, 7  ;;  %v331_v24 = vrot.slane %v305_v22, 1 }
 0x121   :  { %v316_v25 = vsel %vm137_vm2, %v313_v14, %v315_v23  ;;  %v332_v26 = vsel %vm162_vm0, %v329_v15, %v331_v24  ;;  %v337_v40 = vsel %vm162_vm0, %v331_v24, 0.0 }
 0x122   :  { %419 = vmatmul.f32.gmra.mxu2 %v316_v25  ;;  %474 = vmatmul.f32.gmra.mxu1 %v332_v26 }
 0x12a   :  { %520 = vmatmul.msk.f32.gmra.mxu1 %vm519_vm10, %v337_v40 }
 0x18a   :  { %v440_v27 = vpop.f32.mrf.mxu3 }
 0x18d   :  { %v411_v29 = vpop.f32.mrf.mxu2 }
 0x18e   :  { %v412_v30 = vadd.f32 %v545_v28, %v411_v29 }
 0x18f   :  { %v469_v32 = vpop.f32.mrf.mxu0 }
 0x190   :  { %v441_v31 = vadd.f32 %v440_v27, %v412_v30 }
 0x192   :  { %v470_v33 = vadd.f32 %v469_v32, %v441_v31  ;;  %v443_v34 = vpop.f32.mrf.mxu3 }
 0x194   :  { %v481_v35 = vmax.f32 %v470_v33, 0.0 }
 0x195   :  { %v414_v36 = vpop.f32.mrf.mxu2 }
 0x196   :  { %485 = vst [vmem:[#allocation8] sm:$0xff] %v481_v35  ;;  %v415_v37 = vadd.f32 %v545_v28, %v414_v36 }
 0x197   :  { %v472_v51 = vpop.f32.mrf.mxu1 }
 0x198   :  { %v444_v38 = vadd.f32 %v443_v34, %v415_v37 }
 0x19a   :  { %v473_v39 = vadd.f32 %v472_v51, %v444_v38  ;;  %v446_v42 = vpop.f32.mrf.mxu3 }
 0x19c   :  { %v482_v41 = vmax.f32 %v473_v39, 0.0 }
 0x19d   :  { %v417_v43 = vpop.f32.mrf.mxu2 }
 0x19e   :  { %486 = vst [vmem:[#allocation8 + $0x8] sm:$0xff] %v482_v41  ;;  %v418_v44 = vadd.f32 %v545_v28, %v417_v43 }
 0x19f   :  { %v475_v45 = vpop.f32.mrf.mxu1 }
 0x1a0   :  { %v447_v46 = vadd.f32 %v446_v42, %v418_v44 }
 0x1a2   :  { %v476_v47 = vadd.f32 %v475_v45, %v447_v46  ;;  %v449_v52 = vpop.f32.mrf.mxu3 }
 0x1a4   :  { %v483_v48 = vmax.f32 %v476_v47, 0.0 }
 0x1a5   :  { %v420_v49 = vpop.f32.mrf.mxu2 }
 0x1a6   :  { %487 = vst [vmem:[#allocation8 + $0x10] sm:$0xff] %v483_v48  ;;  %v421_v50 = vadd.f32 %v545_v28, %v420_v49 }
 0x1a7   :  { %v478_v54 = vpop.f32.mrf.mxu1 }
 0x1a8   :  { %v450_v53 = vadd.f32 %v449_v52, %v421_v50 }
 0x1aa   :  { %v479_v55 = vadd.f32 %v478_v54, %v450_v53 }
 0x1ac   :  { %v484_v57 = vmax.f32 %v479_v55, 0.0 }
 0x1ae   :  { %488 = vst [vmem:[#allocation8 + $0x18] sm:$0xff] %v484_v57 }
 0x1af   :  { %501 = dma.vmem_to_hbm [thread:$0]  %s494_s11, 512, %s496_s14, [#allocation4], %s649_s26, %s649_s26, %s650_s27  }
 0x1b0   :  { %646 = dma.done.wait [#allocation4], 512  }
 0x1b1   :  { %647 = vsyncadd [#allocation4], 4294966784 }
 0x1b2   :  { %506 = vsyncpa [#allocation3], 1 }
 0x1b3   :  { %507 = vsyncpa [#allocation6], 1 }
 0x1b4   :  { %508 = vsyncpa [#allocation4], 1 }

</bundles_post_ra>
